<compile_context>
chip_gen: v5e
topology: v5e:2x2
jax: 0.10.0
libtpu: 0.0.40
codegen_flags: <defaults>
</compile_context>

<pallas_src>
import functools

import jax
import jax.numpy as jnp
from jax.experimental import pallas as pl
from jax.experimental.pallas import tpu as pltpu


def _pick_lane_tile(hw, tm):
    # Last block dim must be a multiple of 128 or equal the full array extent.
    if hw % 128 != 0:
        return hw                                   # one full-extent block, no pad
    tm = max(128, (min(tm, hw) // 128) * 128)
    while hw % tm != 0:                             # pick a tile that divides HW
        tm -= 128
    return tm


def _conn1_kernel(x_ref, w_ref, shift_ref, o_ref):
    # x_ref:     (N*Cin, TM)      f32, lane-dense tile of flattened pixels
    # w_ref:     (N*Cout, N*Cin)  bf16, block-diagonal BN-folded conv weight
    # shift_ref: (N*Cout, 1)      f32, fused conv-bias + BN shift
    # o_ref:     (N*Cout, TM)     f32 output tile (full sublane tiles)
    x = x_ref[...].astype(jnp.bfloat16)             # in-kernel cast, no extra HBM pass
    y = jnp.dot(w_ref[...], x, preferred_element_type=jnp.float32) + shift_ref[...]
    # SiLU: y * sigmoid(y); exp and reciprocal both go to the EUP slot.
    sig = pl.reciprocal(1.0 + jnp.exp(-y), approx=True)
    o_ref[...] = (y * sig).astype(o_ref.dtype)


@functools.partial(jax.jit, static_argnames=("eps", "tm"))
def connection1_forward(x_nchw, w_oi, conv_bias, gamma, beta,
                        running_mean, running_var, eps=1e-5, tm=1024):
    """x_nchw: (N, Cin, H, W). w_oi: (Cout, Cin) (1x1 conv kernel squeezed)."""
    N, Cin, H, W = x_nchw.shape
    Cout = w_oi.shape[0]
    HW = H * W

    # ---- fold BN (eval mode) + conv bias into weight / per-channel shift
    inv_std = jax.lax.rsqrt(running_var.astype(jnp.float32) + eps)
    scale = gamma.astype(jnp.float32) * inv_std                       # (Cout,)
    w_scaled = w_oi.astype(jnp.float32) * scale[:, None]              # (Cout, Cin)
    shift = ((conv_bias.astype(jnp.float32) - running_mean.astype(jnp.float32))
             * scale + beta.astype(jnp.float32))                      # (Cout,)

    # ---- fold batch into channels (block-diagonal weight); no transpose needed
    x2d = x_nchw.reshape(N * Cin, HW)                                 # native dtype
    w_blk = jnp.kron(jnp.eye(N, dtype=jnp.float32),
                     w_scaled).astype(jnp.bfloat16)                   # (N*Cout, N*Cin)
    shift_blk = jnp.tile(shift.reshape(Cout, 1), (N, 1))              # (N*Cout, 1)

    # ---- lane tiling of HW; single step at small sizes, >=2 parallel steps
    #      (for v7x's two TensorCores) once HW grows past tm.
    tm_eff = _pick_lane_tile(HW, tm)
    grid = (HW // tm_eff,)

    flops = 2 * HW * (N * Cin) * (N * Cout)
    bytes_accessed = (x2d.size * x2d.dtype.itemsize + w_blk.size * 2
                      + shift_blk.size * 4 + N * Cout * HW * 4)
    cost = pl.CostEstimate(flops=flops, transcendentals=N * Cout * HW,
                           bytes_accessed=bytes_accessed)

    out2d = pl.pallas_call(
        _conn1_kernel,
        out_shape=jax.ShapeDtypeStruct((N * Cout, HW), jnp.float32),
        grid=grid,
        in_specs=[
            pl.BlockSpec((N * Cin, tm_eff), lambda j: (0, j)),
            pl.BlockSpec((N * Cout, N * Cin), lambda j: (0, 0)),
            pl.BlockSpec((N * Cout, 1), lambda j: (0, 0)),
        ],
        out_specs=pl.BlockSpec((N * Cout, tm_eff), lambda j: (0, j)),
        compiler_params=pltpu.CompilerParams(dimension_semantics=("parallel",)),
        cost_estimate=cost,
    )(x2d, w_blk, shift_blk)

    return out2d.reshape(N, Cout, H, W)


if __name__ == "__main__":
    # Small shapes consistent with the module: batch=2, in_channels=4,
    # out_channels=8, spatial 16x16.
    N, Cin, Cout, H, W = 2, 4, 8, 16, 16

    key = jax.random.PRNGKey(0)
    kx, kw, kb = jax.random.split(key, 3)

    x = jax.random.normal(kx, (N, Cin, H, W), dtype=jnp.float32)

    # Deterministic synthetic parameters (shapes match nn.Conv2d(4, 8, 1) and
    # nn.BatchNorm2d(8)).
    w = jax.random.normal(kw, (Cout, Cin), dtype=jnp.float32) * 0.1   # conv1.weight
    b = jax.random.normal(kb, (Cout,), dtype=jnp.float32) * 0.1       # conv1.bias
    gamma = 1.0 + 0.1 * jnp.arange(Cout, dtype=jnp.float32)           # bn.weight
    beta = 0.01 * jnp.arange(Cout, dtype=jnp.float32)                 # bn.bias
    running_mean = 0.05 * jnp.arange(Cout, dtype=jnp.float32)
    running_var = 1.0 + 0.02 * jnp.arange(Cout, dtype=jnp.float32)

    out = connection1_forward(x, w, b, gamma, beta, running_mean, running_var)
    out = jax.block_until_ready(out)

    # Reference computation in plain f32 JAX (same semantics, eval-mode BN).
    ref_y = jnp.einsum("nchw,oc->nohw", x, w) + b[None, :, None, None]
    ref_y = (ref_y - running_mean[None, :, None, None]) / jnp.sqrt(
        running_var[None, :, None, None] + 1e-5)
    ref_y = ref_y * gamma[None, :, None, None] + beta[None, :, None, None]
    ref = ref_y * jax.nn.sigmoid(ref_y)

    assert out.shape == (N, Cout, H, W)
    # bf16 MXU inputs + approx reciprocal in SiLU -> ~1e-3 abs error; 1e-2 tol.
    assert jnp.allclose(out, ref, atol=1e-2, rtol=1e-2), float(
        jnp.max(jnp.abs(out - ref)))

    print("KERNEL_OK")
</pallas_src>

<mosaic_0001>
module attributes {stable_mosaic.version = 11 : i64} {
  func.func @_conn1_kernel(%arg0: i32, %arg1: memref<8x256xf32, #tpu.memory_space<vmem>>, %arg2: memref<16x8xbf16, #tpu.memory_space<vmem>>, %arg3: memref<16x1xf32, #tpu.memory_space<vmem>>, %arg4: memref<16x256xf32, #tpu.memory_space<vmem>>) attributes {dimension_semantics = [#tpu.dimension_semantics<parallel>], iteration_bounds = array<i64: 1>, scalar_prefetch = 0 : i64, scratch_operands = 0 : i64, tpu.core_type = #tpu.core_type<tc>, window_params = [{transform_indices = @transform_0, window_bounds = array<i64: 8, 256>}, {pipeline_mode = #tpu.pipeline_mode<synchronous>, transform_indices = @transform_1, window_bounds = array<i64: 16, 8>}, {pipeline_mode = #tpu.pipeline_mode<synchronous>, transform_indices = @transform_2, window_bounds = array<i64: 16, 1>}, {transform_indices = @transform_3, window_bounds = array<i64: 16, 256>}]} {
    %c0 = arith.constant 0 : index
    %c0_0 = arith.constant 0 : index
    %0 = vector.load %arg1[%c0, %c0_0] : memref<8x256xf32, #tpu.memory_space<vmem>>, vector<8x256xf32>
    %1 = arith.truncf %0 : vector<8x256xf32> to vector<8x256xbf16>
    %c0_1 = arith.constant 0 : index
    %c0_2 = arith.constant 0 : index
    %2 = vector.load %arg2[%c0_1, %c0_2] : memref<16x8xbf16, #tpu.memory_space<vmem>>, vector<16x8xbf16>
    %cst = arith.constant dense<0.000000e+00> : vector<16x256xf32>
    %3 = tpu.matmul %2, %1, %cst {dimension_numbers = #tpu.dot_dimension_numbers<[1], [0], [0], [1], [0, 0, 1, 1], [], []>} : vector<16x8xbf16>, vector<8x256xbf16>, vector<16x256xf32> -> vector<16x256xf32>
    %c0_3 = arith.constant 0 : index
    %c0_4 = arith.constant 0 : index
    %4 = vector.load %arg3[%c0_3, %c0_4] : memref<16x1xf32, #tpu.memory_space<vmem>>, vector<16x1xf32>
    %5 = vector.broadcast %4 : vector<16x1xf32> to vector<16x256xf32>
    %6 = arith.addf %3, %5 : vector<16x256xf32>
    %cst_5 = arith.constant 0.000000e+00 : f32
    %7 = vector.broadcast %cst_5 : f32 to vector<16x256xf32>
    %8 = arith.subf %7, %6 : vector<16x256xf32>
    %9 = math.exp %8 : vector<16x256xf32>
    %cst_6 = arith.constant 1.000000e+00 : f32
    %10 = vector.broadcast %cst_6 : f32 to vector<16x256xf32>
    %11 = arith.addf %10, %9 : vector<16x256xf32>
    %12 = tpu.reciprocal %11 {approx = true} : vector<16x256xf32> -> vector<16x256xf32>
    %13 = arith.mulf %6, %12 : vector<16x256xf32>
    %c0_7 = arith.constant 0 : index
    %c0_8 = arith.constant 0 : index
    %14 = vector.load %arg4[%c0_7, %c0_8] : memref<16x256xf32, #tpu.memory_space<vmem>>, vector<16x256xf32>
    tpu.vector_store %arg4[%c0_7, %c0_8], %13 {strides = array<i32>} : memref<16x256xf32, #tpu.memory_space<vmem>>, vector<16x256xf32>,
    return
  }
  func.func @transform_0(%arg0: i32) -> (i32, i32) {
    %c0_i32 = arith.constant 0 : i32
    %c0_i32_0 = arith.constant 0 : i32
    return %c0_i32, %arg0 : i32, i32
  }
  func.func @transform_1(%arg0: i32) -> (i32, i32) {
    %c0_i32 = arith.constant 0 : i32
    %c0_i32_0 = arith.constant 0 : i32
    %c0_i32_1 = arith.constant 0 : i32
    return %c0_i32, %c0_i32_0 : i32, i32
  }
  func.func @transform_2(%arg0: i32) -> (i32, i32) {
    %c0_i32 = arith.constant 0 : i32
    %c0_i32_0 = arith.constant 0 : i32
    %c0_i32_1 = arith.constant 0 : i32
    return %c0_i32, %c0_i32_0 : i32, i32
  }
  func.func @transform_3(%arg0: i32) -> (i32, i32) {
    %c0_i32 = arith.constant 0 : i32
    %c0_i32_0 = arith.constant 0 : i32
    return %c0_i32, %arg0 : i32, i32
  }
}

</mosaic_0001>

<bundles_post_ra>
// kernel: connection1_forward.1
= control target key start
LH: loop header
LB: loop body
LE: loop exit
PB: predicated region body
PF: predicated region fallthrough
CT: control target
= control target key end

     0   :  { %vm42_vm0 = vcmask 1043456   ;;  %v134_v2 = vmov 0   ;;  %vm38_vm1 = vcmask 64512   ;;  %s182_s0 = inlined_call_operand.vmem [shape: f32[8,256], index: 0, kind: input, shape index: {}]   ;;  %s183_s2 = inlined_call_operand.vmem [shape: f32[16,1], index: 2, kind: input, shape index: {}]   ;;  %s184_s1 = inlined_call_operand.vmem [shape: bf16[16,8], index: 1, kind: input, shape index: {}]   ;;  %s185_s3 = inlined_call_operand.vmem [shape: f32[16,256], index: 3, kind: output, shape index: {}]  }
   0x1   :  { %v15_v0 = vld [vmem:[%s182_s0] sm:$0xff]  ;;  %v16_v1 = vld [vmem:[%s182_s0 + $0x8] sm:$0xff]  ;;  %117 = vset.pattern.permute.xlu0 %v134_v2 }
   0x2   :  { %v17_v3 = vpack.c.bf16 %v15_v0, %v15_v0  ;;  %v18_v4 = vpack.c.bf16 %v16_v1, %v16_v1  ;;  %v21_v5 = vld [vmem:[%s183_s2] sm:$0xff]  ;;  %v22_v9 = vld [vmem:[%s183_s2 + $0x8] sm:$0xff] }
   0x3   :  { %25 = vperm.xlu0 %117, %v21_v5   ;;  %v115_v8 = vld [vmem:[%s184_s1] sm:$0xff] }
   0x4   :  { %v44_v6 = vsel %vm42_vm0, %v17_v3, 0  ;;  %v47_v7 = vsel %vm42_vm0, %v18_v4, 0 }
   0x5   :  { %56 = vmatpush.bf16.msra.mxu0 %v44_v6  ;;  %70 = vmatpush.bf16.msra.mxu1 %v47_v7 }
   0x8   :  { %113 = vmatmul.msk.bf16.vlgmr.msra.gmra.mxu0 %vm38_vm1, %v115_v8  ;;  %114 = vmatmul.msk.bf16.vlgmr.msra.gmra.mxu1 %vm38_vm1, %v115_v8 }
   0xb   :  { %30 = vperm.xlu0 %117, %v22_v9  }
  0x75   :  { %v26_v10 = vpop.permute.xlu0 %25 }
  0x7d   :  { %v31_v19 = vpop.permute.xlu0 %30 }
  0x85   :  { %v58_v11 = vpop.f32.mrf.mxu0  ;;  %v72_v12 = vpop.f32.mrf.mxu1 }
  0x86   :  { %v59_v13 = vadd.f32 %v58_v11, %v26_v10  ;;  %v73_v14 = vadd.f32 %v72_v12, %v26_v10 }
  0x88   :  { %v77_v15 = vsub.f32 0.0, %v59_v13  ;;  %v78_v16 = vsub.f32 0.0, %v73_v14 }
  0x8a   :  { %v81_v17 = vmul.f32 1.442695, %v77_v15  ;;  %v83_v18 = vmul.f32 1.442695, %v78_v16 }
  0x8c   :  { %118 = vpow2.f32 %v81_v17 }
  0x8d   :  { %120 = vpow2.f32 %v83_v18  ;;  %v60_v20 = vpop.f32.mrf.mxu0  ;;  %v74_v21 = vpop.f32.mrf.mxu1 }
  0x8e   :  { %v61_v22 = vadd.f32 %v60_v20, %v31_v19  ;;  %v75_v23 = vadd.f32 %v74_v21, %v31_v19 }
  0x90   :  { %v79_v24 = vsub.f32 0.0, %v61_v22  ;;  %v80_v25 = vsub.f32 0.0, %v75_v23 }
  0x92   :  { %v119_v26 = vpop.eup %118  ;;  %v85_v27 = vmul.f32 1.442695, %v79_v24  ;;  %v87_v30 = vmul.f32 1.442695, %v80_v25 }
  0x93   :  { %v121_v28 = vpop.eup %120  ;;  %v89_v29 = vadd.f32 1.0, %v119_v26 }
  0x94   :  { %v90_v31 = vadd.f32 1.0, %v121_v28  ;;  %122 = vpow2.f32 %v85_v27 }
  0x95   :  { %124 = vrcp.f32 %v89_v29 }
  0x96   :  { %126 = vrcp.f32 %v90_v31 }
  0x97   :  { %128 = vpow2.f32 %v87_v30 }
  0x9a   :  { %v123_v32 = vpop.eup %122 }
  0x9b   :  { %v125_v33 = vpop.eup %124  ;;  %v91_v34 = vadd.f32 1.0, %v123_v32 }
  0x9c   :  { %v127_v35 = vpop.eup %126  ;;  %v97_v36 = vmul.f32 %v125_v33, %v59_v13 }
  0x9d   :  { %v129_v37 = vpop.eup %128  ;;  %v98_v38 = vmul.f32 %v127_v35, %v73_v14  ;;  %130 = vrcp.f32 %v91_v34 }
  0x9e   :  { %101 = vst [vmem:[%s185_s3] sm:$0xff] %v97_v36  ;;  %v92_v39 = vadd.f32 1.0, %v129_v37 }
  0x9f   :  { %102 = vst [vmem:[%s185_s3 + $0x8] sm:$0xff] %v98_v38 }
  0xa0   :  { %132 = vrcp.f32 %v92_v39 }
  0xa3   :  { %v131_v40 = vpop.eup %130 }
  0xa4   :  { %v99_v41 = vmul.f32 %v131_v40, %v61_v22 }
  0xa6   :  { %v133_v42 = vpop.eup %132  ;;  %103 = vst [vmem:[%s185_s3 + $0x10] sm:$0xff] %v99_v41 }
  0xa7   :  { %v100_v43 = vmul.f32 %v133_v42, %v75_v23 }
  0xa9   :  { %104 = vst [vmem:[%s185_s3 + $0x18] sm:$0xff] %v100_v43 }

</bundles_post_ra>
